<compile_context>
chip_gen: v5e
topology: v5e:2x2
jax: 0.10.0
libtpu: 0.0.40
codegen_flags: <defaults>
</compile_context>

<pallas_src>
from functools import partial

import jax
import jax.numpy as jnp
import numpy as np
from jax import lax
from jax.experimental import pallas as pl
from jax.experimental.pallas import tpu as pltpu

HIDDEN = 512          # hidden_units in the reference script
N_HIDDEN_LAYERS = 2   # hidden_layers in the reference script


def _round_up(x, m):
    return (x + m - 1) // m * m


def _mlp_critic_kernel(obs_ref, w1_ref, b1_ref, w2_ref, b2_ref, w3t_ref, b3_ref,
                       out_ref):
    # f32 obs tile -> bf16 in-register (no wrapper-side cast pass over HBM).
    x = obs_ref[...].astype(jnp.bfloat16)

    # Layer 1: [tb, obs_dim](bf16) @ [obs_dim, H](bf16) -> f32 acc, +bias,
    # downcast to bf16, tanh (bf16 EUP path on v6e/v7x; extended on v5e).
    a1 = jnp.dot(x, w1_ref[...], preferred_element_type=jnp.float32) + b1_ref[...]
    h1 = jnp.tanh(a1.astype(jnp.bfloat16))

    # Layer 2: [tb, H](bf16) @ [H, H](bf16) -> f32 acc, +bias, bf16 tanh.
    a2 = jnp.dot(h1, w2_ref[...], preferred_element_type=jnp.float32) + b2_ref[...]
    h2 = jnp.tanh(a2.astype(jnp.bfloat16))

    # Output layer (out_features == 1): contract w3^T [1, H] with h2 [tb, H]
    # along H -> lane-dense [1, tb] f32 result (unmasked stores), instead of a
    # lane-sparse [tb, 1] column.
    v = lax.dot_general(w3t_ref[...], h2, (((1,), (1,)), ((), ())),
                        preferred_element_type=jnp.float32) + b3_ref[...]
    out_ref[...] = v[None].astype(out_ref.dtype)   # [1, 1, tb]


def prepare_params(params):
    """One-time conversion of f32 nn.Linear-style params to the kernel layout.

    Returns (w1_bf16[obs_dim,H], b1_f32[1,H], w2_bf16[H,H], b2_f32[1,H],
             w3t_bf16[1,H], b3_f32[1,1]).
    """
    w1, b1, w2, b2, w3, b3 = params
    return (w1.astype(jnp.bfloat16), b1.astype(jnp.float32),
            w2.astype(jnp.bfloat16), b2.astype(jnp.float32),
            jnp.transpose(w3).astype(jnp.bfloat16), b3.astype(jnp.float32))


@partial(jax.jit, static_argnames=("tb",))
def mlp_critic_forward(obs, prepared, tb=None):
    """obs: [B, obs_dim] float32. prepared: output of prepare_params.

    Returns value estimates of shape [B] (float32).
    """
    w1, b1, w2, b2, w3t, b3 = prepared
    B, obs_dim = obs.shape
    H = w1.shape[1]

    if tb is None:
        if B <= 512:
            tb = _round_up(B, 8)                 # single tile
        else:
            # Big tiles (>=512 rows) so the ~0.35us/step grid overhead is
            # negligible, but at least two tiles so a second TensorCore (v7x)
            # has work.  Footprint at tb=1024 is only a few MiB of VMEM.
            tb = min(1024, max(512, _round_up(pl.cdiv(B, 2), 128)))
    tb = max(8, _round_up(tb, 8))
    num_tiles = pl.cdiv(B, tb)                   # ragged last tile handled by Pallas

    # Weight/bias blocks have a constant block index -> fetched once, resident
    # across all batch tiles.
    def resident(shape):
        return pl.BlockSpec(shape, lambda i: tuple(0 for _ in shape))

    out = pl.pallas_call(
        _mlp_critic_kernel,
        out_shape=jax.ShapeDtypeStruct((num_tiles, 1, tb), jnp.float32),
        grid=(num_tiles,),
        in_specs=[
            pl.BlockSpec((tb, obs_dim), lambda i: (i, 0)),   # obs batch tile (f32)
            resident((obs_dim, H)),                          # w1 (bf16)
            resident((1, H)),                                # b1 (f32)
            resident((H, H)),                                # w2 (bf16)
            resident((1, H)),                                # b2 (f32)
            resident((1, H)),                                # w3^T (bf16)
            resident((1, 1)),                                # b3 (f32)
        ],
        # Lane-dense output slab per batch tile: last two block dims equal the
        # full array dims, so this lowers cleanly on every TPU generation.
        out_specs=pl.BlockSpec((1, 1, tb), lambda i: (i, 0, 0)),
        compiler_params=pltpu.CompilerParams(
            # Batch tiles are independent.  (v7x follow-up: CORE_PARALLEL /
            # core_map for explicit 2-TC sharding, pending verification.)
            dimension_semantics=("parallel",),
        ),
    )(obs, w1, b1, w2, b2, w3t, b3)

    # torch.squeeze(..., -1); drop rows belonging to the padded last tile.
    return out.reshape(num_tiles * tb)[:B]


def init_params(key, obs_dim, hidden_sizes):
    """Mimics torch.nn.Linear default init (U[-1/sqrt(fan_in), +1/sqrt(fan_in)])."""
    sizes = [obs_dim] + list(hidden_sizes) + [1]
    params = []
    for j in range(len(sizes) - 1):
        fan_in, fan_out = sizes[j], sizes[j + 1]
        key, kw, kb = jax.random.split(key, 3)
        bound = 1.0 / np.sqrt(fan_in)
        w = jax.random.uniform(kw, (fan_in, fan_out), jnp.float32, -bound, bound)
        b = jax.random.uniform(kb, (1, fan_out), jnp.float32, -bound, bound)
        params += [w, b]
    return tuple(params)


def reference_forward_f32(obs, params):
    """Pure-JAX f32 reference (matches the PyTorch module's numerics)."""
    w1, b1, w2, b2, w3, b3 = params
    h1 = jnp.tanh(obs @ w1 + b1)
    h2 = jnp.tanh(h1 @ w2 + b2)
    return jnp.squeeze(h2 @ w3 + b3, axis=-1)


def reference_forward_bf16(obs, params):
    """Pure-JAX reference matching the kernel's bf16/f32-accumulate numerics."""
    w1, b1, w2, b2, w3, b3 = params
    x = obs.astype(jnp.bfloat16)
    a1 = jnp.dot(x, w1.astype(jnp.bfloat16),
                 preferred_element_type=jnp.float32) + b1
    h1 = jnp.tanh(a1.astype(jnp.bfloat16))
    a2 = jnp.dot(h1, w2.astype(jnp.bfloat16),
                 preferred_element_type=jnp.float32) + b2
    h2 = jnp.tanh(a2.astype(jnp.bfloat16))
    w3t = jnp.transpose(w3).astype(jnp.bfloat16)
    v = lax.dot_general(w3t, h2, (((1,), (1,)), ((), ())),
                        preferred_element_type=jnp.float32) + b3
    return jnp.squeeze(v, axis=0)


if __name__ == "__main__":
    key = jax.random.PRNGKey(0)
    k_obs, k_params = jax.random.split(key)

    B = 8
    OBS_DIM = 32
    hidden_sizes = tuple([HIDDEN] * N_HIDDEN_LAYERS)

    obs = jax.random.normal(k_obs, (B, OBS_DIM), dtype=jnp.float32)
    params = init_params(k_params, OBS_DIM, hidden_sizes)
    prepared = prepare_params(params)       # one-time bf16 conversion / transpose

    v = jax.block_until_ready(mlp_critic_forward(obs, prepared))
    assert v.shape == (B,)

    # Apples-to-apples check against a bf16-matched JAX reference.
    v_bf16_ref = reference_forward_bf16(obs, params)
    np.testing.assert_allclose(np.asarray(v), np.asarray(v_bf16_ref),
                               rtol=2e-2, atol=2e-2)

    # Looser check against the exact f32 module semantics (bf16 rounding).
    v_f32_ref = reference_forward_f32(obs, params)
    np.testing.assert_allclose(np.asarray(v), np.asarray(v_f32_ref),
                               rtol=5e-2, atol=5e-2)

    # Exercise the multi-tile path with a ragged last tile (no wrapper padding).
    B2 = 40
    obs2 = jax.random.normal(jax.random.PRNGKey(1), (B2, OBS_DIM), dtype=jnp.float32)
    v2 = jax.block_until_ready(mlp_critic_forward(obs2, prepared, tb=16))
    assert v2.shape == (B2,)
    np.testing.assert_allclose(np.asarray(v2),
                               np.asarray(reference_forward_f32(obs2, params)),
                               rtol=5e-2, atol=5e-2)

    print("KERNEL_OK")
</pallas_src>

<mosaic_0001>
module attributes {stable_mosaic.version = 11 : i64} {
  func.func @_mlp_critic_kernel(%arg0: i32, %arg1: memref<8x32xf32, #tpu.memory_space<vmem>>, %arg2: memref<32x512xbf16, #tpu.memory_space<vmem>>, %arg3: memref<1x512xf32, #tpu.memory_space<vmem>>, %arg4: memref<512x512xbf16, #tpu.memory_space<vmem>>, %arg5: memref<1x512xf32, #tpu.memory_space<vmem>>, %arg6: memref<1x512xbf16, #tpu.memory_space<vmem>>, %arg7: memref<1x1xf32, #tpu.memory_space<vmem>>, %arg8: memref<1x1x8xf32, #tpu.memory_space<vmem>>) attributes {dimension_semantics = [#tpu.dimension_semantics<parallel>], iteration_bounds = array<i64: 1>, scalar_prefetch = 0 : i64, scratch_operands = 0 : i64, tpu.core_type = #tpu.core_type<tc>, window_params = [{transform_indices = @transform_0, window_bounds = array<i64: 8, 32>}, {pipeline_mode = #tpu.pipeline_mode<synchronous>, transform_indices = @transform_1, window_bounds = array<i64: 32, 512>}, {pipeline_mode = #tpu.pipeline_mode<synchronous>, transform_indices = @transform_2, window_bounds = array<i64: 1, 512>}, {pipeline_mode = #tpu.pipeline_mode<synchronous>, transform_indices = @transform_3, window_bounds = array<i64: 512, 512>}, {pipeline_mode = #tpu.pipeline_mode<synchronous>, transform_indices = @transform_4, window_bounds = array<i64: 1, 512>}, {pipeline_mode = #tpu.pipeline_mode<synchronous>, transform_indices = @transform_5, window_bounds = array<i64: 1, 512>}, {pipeline_mode = #tpu.pipeline_mode<synchronous>, transform_indices = @transform_6, window_bounds = array<i64: 1, 1>}, {transform_indices = @transform_7, window_bounds = array<i64: 1, 1, 8>}]} {
    %c0 = arith.constant 0 : index
    %c0_0 = arith.constant 0 : index
    %0 = vector.load %arg1[%c0, %c0_0] : memref<8x32xf32, #tpu.memory_space<vmem>>, vector<8x32xf32>
    %1 = arith.truncf %0 : vector<8x32xf32> to vector<8x32xbf16>
    %c0_1 = arith.constant 0 : index
    %c0_2 = arith.constant 0 : index
    %2 = vector.load %arg2[%c0_1, %c0_2] : memref<32x512xbf16, #tpu.memory_space<vmem>>, vector<32x512xbf16>
    %cst = arith.constant dense<0.000000e+00> : vector<8x512xf32>
    %3 = tpu.matmul %1, %2, %cst {dimension_numbers = #tpu.dot_dimension_numbers<[1], [0], [0], [1], [0, 0, 1, 1], [], []>} : vector<8x32xbf16>, vector<32x512xbf16>, vector<8x512xf32> -> vector<8x512xf32>
    %c0_3 = arith.constant 0 : index
    %c0_4 = arith.constant 0 : index
    %4 = vector.load %arg3[%c0_3, %c0_4] : memref<1x512xf32, #tpu.memory_space<vmem>>, vector<1x512xf32>
    %5 = vector.broadcast %4 : vector<1x512xf32> to vector<8x512xf32>
    %6 = arith.addf %3, %5 : vector<8x512xf32>
    %7 = arith.truncf %6 : vector<8x512xf32> to vector<8x512xbf16>
    %8 = math.tanh %7 : vector<8x512xbf16>
    %c0_5 = arith.constant 0 : index
    %c0_6 = arith.constant 0 : index
    %9 = vector.load %arg4[%c0_5, %c0_6] : memref<512x512xbf16, #tpu.memory_space<vmem>>, vector<512x512xbf16>
    %cst_7 = arith.constant dense<0.000000e+00> : vector<8x512xf32>
    %10 = tpu.matmul %8, %9, %cst_7 {dimension_numbers = #tpu.dot_dimension_numbers<[1], [0], [0], [1], [0, 0, 1, 1], [], []>} : vector<8x512xbf16>, vector<512x512xbf16>, vector<8x512xf32> -> vector<8x512xf32>
    %c0_8 = arith.constant 0 : index
    %c0_9 = arith.constant 0 : index
    %11 = vector.load %arg5[%c0_8, %c0_9] : memref<1x512xf32, #tpu.memory_space<vmem>>, vector<1x512xf32>
    %12 = vector.broadcast %11 : vector<1x512xf32> to vector<8x512xf32>
    %13 = arith.addf %10, %12 : vector<8x512xf32>
    %14 = arith.truncf %13 : vector<8x512xf32> to vector<8x512xbf16>
    %15 = math.tanh %14 : vector<8x512xbf16>
    %c0_10 = arith.constant 0 : index
    %c0_11 = arith.constant 0 : index
    %16 = vector.load %arg6[%c0_10, %c0_11] : memref<1x512xbf16, #tpu.memory_space<vmem>>, vector<1x512xbf16>
    %cst_12 = arith.constant dense<0.000000e+00> : vector<1x8xf32>
    %17 = tpu.matmul %16, %15, %cst_12 {dimension_numbers = #tpu.dot_dimension_numbers<[1], [1], [0], [0], [0, 0, 1, 0], [], []>} : vector<1x512xbf16>, vector<8x512xbf16>, vector<1x8xf32> -> vector<1x8xf32>
    %c0_13 = arith.constant 0 : index
    %c0_14 = arith.constant 0 : index
    %18 = vector.load %arg7[%c0_13, %c0_14] : memref<1x1xf32, #tpu.memory_space<vmem>>, vector<1x1xf32>
    %19 = vector.broadcast %18 : vector<1x1xf32> to vector<1x8xf32>
    %20 = arith.addf %17, %19 : vector<1x8xf32>
    %21 = vector.shape_cast %20 : vector<1x8xf32> to vector<1x1x8xf32>
    %c0_15 = arith.constant 0 : index
    %c0_16 = arith.constant 0 : index
    %c0_17 = arith.constant 0 : index
    %22 = vector.load %arg8[%c0_15, %c0_16, %c0_17] : memref<1x1x8xf32, #tpu.memory_space<vmem>>, vector<1x1x8xf32>
    tpu.vector_store %arg8[%c0_15, %c0_16, %c0_17], %21 {strides = array<i32>} : memref<1x1x8xf32, #tpu.memory_space<vmem>>, vector<1x1x8xf32>,
    return
  }
  func.func @transform_0(%arg0: i32) -> (i32, i32) {
    %c0_i32 = arith.constant 0 : i32
    %c0_i32_0 = arith.constant 0 : i32
    return %arg0, %c0_i32 : i32, i32
  }
  func.func @transform_1(%arg0: i32) -> (i32, i32) {
    %c0_i32 = arith.constant 0 : i32
    %c0_i32_0 = arith.constant 0 : i32
    %c0_i32_1 = arith.constant 0 : i32
    return %c0_i32, %c0_i32_0 : i32, i32
  }
  func.func @transform_2(%arg0: i32) -> (i32, i32) {
    %c0_i32 = arith.constant 0 : i32
    %c0_i32_0 = arith.constant 0 : i32
    %c0_i32_1 = arith.constant 0 : i32
    return %c0_i32, %c0_i32_0 : i32, i32
  }
  func.func @transform_3(%arg0: i32) -> (i32, i32) {
    %c0_i32 = arith.constant 0 : i32
    %c0_i32_0 = arith.constant 0 : i32
    %c0_i32_1 = arith.constant 0 : i32
    return %c0_i32, %c0_i32_0 : i32, i32
  }
  func.func @transform_4(%arg0: i32) -> (i32, i32) {
    %c0_i32 = arith.constant 0 : i32
    %c0_i32_0 = arith.constant 0 : i32
    %c0_i32_1 = arith.constant 0 : i32
    return %c0_i32, %c0_i32_0 : i32, i32
  }
  func.func @transform_5(%arg0: i32) -> (i32, i32) {
    %c0_i32 = arith.constant 0 : i32
    %c0_i32_0 = arith.constant 0 : i32
    %c0_i32_1 = arith.constant 0 : i32
    return %c0_i32, %c0_i32_0 : i32, i32
  }
  func.func @transform_6(%arg0: i32) -> (i32, i32) {
    %c0_i32 = arith.constant 0 : i32
    %c0_i32_0 = arith.constant 0 : i32
    %c0_i32_1 = arith.constant 0 : i32
    return %c0_i32, %c0_i32_0 : i32, i32
  }
  func.func @transform_7(%arg0: i32) -> (i32, i32, i32) {
    %c0_i32 = arith.constant 0 : i32
    %c0_i32_0 = arith.constant 0 : i32
    %c0_i32_1 = arith.constant 0 : i32
    return %arg0, %c0_i32, %c0_i32_0 : i32, i32, i32
  }
}

</mosaic_0001>

<bundles_post_ra>
// kernel: mlp_critic_forward.1
= control target key start
LH: loop header
LB: loop body
LE: loop exit
PB: predicated region body
PF: predicated region fallthrough
CT: control target
= control target key end

     0   :  { %s2296_s0 = inlined_call_operand.hbm [shape: f32[8,32], index: 0, kind: input, shape index: {}]   ;;  %s2297_s1 = inlined_call_operand.hbm [shape: bf16[32,512], index: 1, kind: input, shape index: {}]   ;;  %s2298_s2 = inlined_call_operand.hbm [shape: f32[1,512], index: 2, kind: input, shape index: {}]   ;;  %s2299_s3 = inlined_call_operand.hbm [shape: bf16[512,512], index: 3, kind: input, shape index: {}]   ;;  %s2300_s4 = inlined_call_operand.vmem [shape: f32[1,512], index: 4, kind: input, shape index: {}]   ;;  %s2301_s5 = inlined_call_operand.hbm [shape: bf16[1,512], index: 5, kind: input, shape index: {}]   ;;  %s2302_s6 = inlined_call_operand.<no memory space> [shape: f32[1,1], index: 6, kind: input, shape index: {}]   ;;  %s2303_s7 = inlined_call_operand.hbm [shape: f32[1,1,8], index: 7, kind: output, shape index: {}]  }
   0x1   :  { %v12_v0 = vstv %s2302_s6 }
   0x2   :  { %13 = vst [vmem:[#allocation2] sm:$0x1] %v12_v0 }
   0x3   :  { %14 = vsyncpa [#allocation4], 0 }
   0x4   :  { %15 = vsyncpa [#allocation7], 0 }
   0x5   :  { %16 = vsyncpa [#allocation10], 0  ;;  %s33_s28 = sshll.u32 %s2297_s1, 4  ;;  %s34_s28 = int_to_ptr.hbm [resolvable:$true] %s33_s28 }
   0x6   :  { %17 = vsyncpa [#allocation5], 0  ;;  %s2189_s29 = smov [#allocation6]   ;;  %s57_s10 = sshll.u32 %s2299_s3, 4  ;;  %s58_s10 = int_to_ptr.hbm [resolvable:$true] %s57_s10 }
   0x7   :  { %s35_s30 = sshll.u32 %s2189_s29, 4  ;;  %s2190_s11 = smov 256   ;;  %s36_s30 = int_to_ptr.vmem [resolvable:$true] %s35_s30 }
   0x8   :  { %s2191_s12 = smov 16   ;;  %s2192_s6 = smov [#allocation9]  }
   0x9   :  { %41 = dma.hbm_to_vmem [thread:$0]  %s34_s28, 1024, %s36_s30, [#allocation7], %s2190_s11, %s2190_s11, %s2191_s12  }
   0xa   :  { %s59_s13 = sshll.u32 %s2192_s6, 4  ;;  %s23_s16 = sshll.u32 %s2296_s0, 4  ;;  %s60_s13 = int_to_ptr.vmem [resolvable:$true] %s59_s13  ;;  %s24_s16 = int_to_ptr.hbm [resolvable:$true] %s23_s16 }
   0xb   :  { %65 = dma.hbm_to_vmem [thread:$0]  %s58_s10, 16384, %s60_s13, [#allocation10], %s2190_s11, %s2190_s11, %s2191_s12  }
   0xc   :  { %s47_s18 = sshll.u32 %s2298_s2, 4  ;;  %s2193_s19 = smov [#allocation3]   ;;  %s48_s18 = int_to_ptr.hbm [resolvable:$true] %s47_s18 }
   0xd   :  { %s25_s20 = sshll.u32 %s2193_s19, 4  ;;  %s2194_s3 = smov [#allocation8]   ;;  %s26_s20 = int_to_ptr.vmem [resolvable:$true] %s25_s20 }
   0xe   :  { %28 = dma.hbm_to_vmem [thread:$0]  %s24_s16, 128, %s26_s20, [#allocation4]  }
   0xf   :  { %s49_s21 = sshll.u32 %s2194_s3, 4  ;;  %s73_s24 = sshll.u32 %s2301_s5, 4  ;;  %s50_s21 = int_to_ptr.vmem [resolvable:$true] %s49_s21  ;;  %s74_s24 = int_to_ptr.hbm [resolvable:$true] %s73_s24 }
  0x10   :  { %52 = dma.hbm_to_vmem [thread:$0]  %s48_s18, 64, %s50_s21, [#allocation7]  }
  0x11   :  { %s2195_s0 = smov [#allocation11]  }
  0x12   :  { %s75_s25 = sshll.u32 %s2195_s0, 4  ;;  %s76_s25 = int_to_ptr.vmem [resolvable:$true] %s75_s25 }
  0x13   :  { %78 = dma.hbm_to_vmem [thread:$0]  %s74_s24, 64, %s76_s25, [#allocation10]  }
  0x14   :  { %2181 = dma.done.wait [#allocation4], 128  }
  0x15   :  { %2182 = vsyncadd [#allocation4], 4294967168 }
  0x16   :  { %2183 = dma.done.wait [#allocation7], 1088  }
  0x17   :  { %2184 = vsyncadd [#allocation7], 4294966208 }
  0x18   :  { %2185 = dma.done.wait [#allocation10], 16448  }
  0x19   :  { %2186 = vsyncadd [#allocation10], 4294950848  ;;  %v1345_v1 = vld [vmem:[#allocation6 + $0x20] sm:$0xf]  ;;  %v1881_v2 = vld [vmem:[#allocation6 + $0x2c] sm:$0xf0] }
  0x1a   :  { %v1879_v3 = vld [vmem:[#allocation6 + $0x24] sm:$0xf]  ;;  %v1346_v4 = vor.u32 %v1881_v2, %v1345_v1  ;;  %v1347_v5 = vld [vmem:[#allocation6 + $0x30] sm:$0xf0]  ;;  %v1353_v6 = vld [vmem:[#allocation6 + $0x28] sm:$0xf] }
  0x1b   :  { %v1882_v7 = vld [vmem:[#allocation6 + $0x34] sm:$0xf0]  ;;  %v1350_v8 = vor.u32 %v1879_v3, %v1347_v5  ;;  %v1880_v10 = vld [vmem:[#allocation6 + $0x2c] sm:$0xf]  ;;  %v1355_v11 = vld [vmem:[#allocation6 + $0x38] sm:$0xf0] }
  0x1c   :  { %v1354_v9 = vor.u32 %v1882_v7, %v1353_v6  ;;  %v1329_v12 = vld [vmem:[#allocation6] sm:$0xf]  ;;  %172 = vmatpush.bf16.msra.mxu0 %v1346_v4  ;;  %v1358_v13 = vor.u32 %v1880_v10, %v1355_v11  ;;  %v1877_v14 = vld [vmem:[#allocation6 + $0xc] sm:$0xf0]  ;;  %v1875_v15 = vld [vmem:[#allocation6 + $0x4] sm:$0xf] }
  0x1d   :  { %v1331_v16 = vld [vmem:[#allocation6 + $0x10] sm:$0xf0]  ;;  %185 = vmatpush.bf16.msra.mxu1 %v1350_v8  ;;  %v1330_v17 = vor.u32 %v1877_v14, %v1329_v12  ;;  %v1337_v19 = vld [vmem:[#allocation6 + $0x8] sm:$0xf]  ;;  %v1878_v20 = vld [vmem:[#allocation6 + $0x14] sm:$0xf0] }
  0x1e   :  { %198 = vmatpush.bf16.msra.mxu2 %v1354_v9  ;;  %v1334_v18 = vor.u32 %v1875_v15, %v1331_v16  ;;  %v1876_v21 = vld [vmem:[#allocation6 + $0xc] sm:$0xf]  ;;  %211 = vmatpush.bf16.msra.mxu3 %v1358_v13  ;;  %v1338_v22 = vor.u32 %v1878_v20, %v1337_v19  ;;  %v1339_v23 = vld [vmem:[#allocation6 + $0x18] sm:$0xf0]  ;;  %vm162_vm0 = vcmask 261120   ;;  %s1315_s29 = sshll.u32 %s2303_s7, 4  ;;  %s1316_s29 = int_to_ptr.hbm [resolvable:$true] %s1315_s29 }
  0x1f   :  { %v102_v24 = vld [vmem:[#allocation3] sm:$0xff]  ;;  %v1477_v25 = vld [vmem:[#allocation9 + $0xe0] sm:$0xf]  ;;  %v1342_v26 = vor.u32 %v1876_v21, %v1339_v23  ;;  %v1913_v28 = vld [vmem:[#allocation9 + $0xec] sm:$0xf0]  ;;  %vm1306_vm1 = vcmask 57344  }
  0x20   :  { %v103_v27 = vpack.c.bf16 %v102_v24, %v102_v24  ;;  %v1605_v29 = vld [vmem:[#allocation9 + $0x1e0] sm:$0xf]  ;;  %v1945_v30 = vld [vmem:[#allocation9 + $0x1ec] sm:$0xf0]  ;;  %173 = vmatpush.bf16.msra.mxu0 %v1330_v17  ;;  %v1478_v31 = vor.u32 %v1913_v28, %v1477_v25 }
  0x21   :  { %v1606_v32 = vor.u32 %v1945_v30, %v1605_v29  ;;  %v1461_v33 = vld [vmem:[#allocation9 + $0xc0] sm:$0xf]  ;;  %v1909_v34 = vld [vmem:[#allocation9 + $0xcc] sm:$0xf0]  ;;  %186 = vmatpush.bf16.msra.mxu1 %v1334_v18 }
  0x22   :  { %v1589_v35 = vld [vmem:[#allocation9 + $0x1c0] sm:$0xf]  ;;  %199 = vmatpush.bf16.msra.mxu2 %v1338_v22  ;;  %v1941_v36 = vld [vmem:[#allocation9 + $0x1cc] sm:$0xf0]  ;;  %212 = vmatpush.bf16.msra.mxu3 %v1342_v26  ;;  %v1462_v39 = vor.u32 %v1909_v34, %v1461_v33 }
  0x23   :  { %v1733_v37 = vld [vmem:[#allocation9 + $0x2e0] sm:$0xf]  ;;  %v1977_v38 = vld [vmem:[#allocation9 + $0x2ec] sm:$0xf0]  ;;  %1359 = vmatmul.msk.bf16.vlgmr.msra.gmra.mxu0 %vm162_vm0, %v103_v27  ;;  %v1590_v44 = vor.u32 %v1941_v36, %v1589_v35 }
  0x24   :  { %1012 = vmatpush.bf16.msrb.mxu0 %v1478_v31  ;;  %v1734_v40 = vor.u32 %v1977_v38, %v1733_v37  ;;  %v1861_v41 = vld [vmem:[#allocation9 + $0x3e0] sm:$0xf]  ;;  %v2009_v42 = vld [vmem:[#allocation9 + $0x3ec] sm:$0xf0]  ;;  %1360 = vmatmul.msk.bf16.vlgmr.msra.gmra.mxu1 %vm162_vm0, %v103_v27 }
  0x25   :  { %v1445_v43 = vld [vmem:[#allocation9 + $0xa0] sm:$0xf]  ;;  %1025 = vmatpush.bf16.msrb.mxu1 %v1606_v32  ;;  %v1862_v45 = vor.u32 %v2009_v42, %v1861_v41  ;;  %v1905_v46 = vld [vmem:[#allocation9 + $0xac] sm:$0xf0]  ;;  %1361 = vmatmul.msk.bf16.vlgmr.msra.gmra.mxu2 %vm162_vm0, %v103_v27 }
  0x26   :  { %v1573_v47 = vld [vmem:[#allocation9 + $0x1a0] sm:$0xf]  ;;  %v1937_v48 = vld [vmem:[#allocation9 + $0x1ac] sm:$0xf0]  ;;  %1362 = vmatmul.msk.bf16.vlgmr.msra.gmra.mxu3 %vm162_vm0, %v103_v27  ;;  %1038 = vmatpush.bf16.msrb.mxu2 %v1734_v40  ;;  %v1446_v54 = vor.u32 %v1905_v46, %v1445_v43 }
  0x27   :  { %v1717_v49 = vld [vmem:[#allocation9 + $0x2c0] sm:$0xf]  ;;  %v1973_v50 = vld [vmem:[#allocation9 + $0x2cc] sm:$0xf0]  ;;  %1051 = vmatpush.bf16.msrb.mxu3 %v1862_v45  ;;  %v1574_v59 = vor.u32 %v1937_v48, %v1573_v47 }
  0x28   :  { %v1845_v51 = vld [vmem:[#allocation9 + $0x3c0] sm:$0xf]  ;;  %v1718_v52 = vor.u32 %v1973_v50, %v1717_v49  ;;  %v2005_v53 = vld [vmem:[#allocation9 + $0x3cc] sm:$0xf0]  ;;  %1013 = vmatpush.bf16.msrb.mxu0 %v1462_v39  ;;  %v1911_v49 = vld [vmem:[#allocation9 + $0xe4] sm:$0xf] }
  0x29   :  { %v1846_v55 = vor.u32 %v2005_v53, %v1845_v51  ;;  %v1429_v56 = vld [vmem:[#allocation9 + $0x80] sm:$0xf]  ;;  %v1901_v57 = vld [vmem:[#allocation9 + $0x8c] sm:$0xf0]  ;;  %1026 = vmatpush.bf16.msrb.mxu1 %v1590_v44  ;;  %v1479_v50 = vld [vmem:[#allocation9 + $0xf0] sm:$0xf0] }
  0x2a   :  { %v1701_v58 = vld [vmem:[#allocation9 + $0x2a0] sm:$0xf]  ;;  %v1969_v60 = vld [vmem:[#allocation9 + $0x2ac] sm:$0xf0]  ;;  %1039 = vmatpush.bf16.msrb.mxu2 %v1718_v52  ;;  %v1430_v2 = vor.u32 %v1901_v57, %v1429_v56  ;;  %v1943_v51 = vld [vmem:[#allocation9 + $0x1e4] sm:$0xf] }
  0x2b   :  { %v1829_v61 = vld [vmem:[#allocation9 + $0x3a0] sm:$0xf]  ;;  %v2001_v62 = vld [vmem:[#allocation9 + $0x3ac] sm:$0xf0]  ;;  %v1702_v1 = vor.u32 %v1969_v60, %v1701_v58  ;;  %1052 = vmatpush.bf16.msrb.mxu3 %v1846_v55  ;;  %v1607_v52 = vld [vmem:[#allocation9 + $0x1f0] sm:$0xf0] }
  0x2c   :  { %v1557_v63 = vld [vmem:[#allocation9 + $0x180] sm:$0xf]  ;;  %v1933_v0 = vld [vmem:[#allocation9 + $0x18c] sm:$0xf0]  ;;  %1014 = vmatpush.bf16.msrb.mxu0 %v1446_v54  ;;  %v1830_v3 = vor.u32 %v2001_v62, %v1829_v61  ;;  %v1907_v56 = vld [vmem:[#allocation9 + $0xc4] sm:$0xf]  ;;  %v1482_v61 = vor.u32 %v1911_v49, %v1479_v50 }
  0x2d   :  { %v1413_v4 = vld [vmem:[#allocation9 + $0x60] sm:$0xf]  ;;  %v1965_v6 = vld [vmem:[#allocation9 + $0x28c] sm:$0xf0]  ;;  %1027 = vmatpush.bf16.msrb.mxu1 %v1574_v59  ;;  %v1558_v7 = vor.u32 %v1933_v0, %v1557_v63  ;;  %v1975_v63 = vld [vmem:[#allocation9 + $0x2e4] sm:$0xf] }
  0x2e   :  { %v1685_v5 = vld [vmem:[#allocation9 + $0x280] sm:$0xf]  ;;  %v1897_v8 = vld [vmem:[#allocation9 + $0x6c] sm:$0xf0]  ;;  %1040 = vmatpush.bf16.msrb.mxu2 %v1702_v1  ;;  %v1735_v0 = vld [vmem:[#allocation9 + $0x2f0] sm:$0xf0]  ;;  %v1610_v1 = vor.u32 %v1943_v51, %v1607_v52 }
  0x2f   :  { %v1813_v9 = vld [vmem:[#allocation9 + $0x380] sm:$0xf]  ;;  %v1997_v10 = vld [vmem:[#allocation9 + $0x38c] sm:$0xf0]  ;;  %v1686_v13 = vor.u32 %v1965_v6, %v1685_v5  ;;  %1053 = vmatpush.bf16.msrb.mxu3 %v1830_v3  ;;  %v1414_v14 = vor.u32 %v1897_v8, %v1413_v4  ;;  %v2007_v3 = vld [vmem:[#allocation9 + $0x3e4] sm:$0xf] }
  0x30   :  { %v1541_v11 = vld [vmem:[#allocation9 + $0x160] sm:$0xf]  ;;  %v1929_v12 = vld [vmem:[#allocation9 + $0x16c] sm:$0xf0]  ;;  %1015 = vmatpush.bf16.msrb.mxu0 %v1430_v2  ;;  %v1814_v15 = vor.u32 %v1997_v10, %v1813_v9  ;;  %v1463_v2 = vld [vmem:[#allocation9 + $0xd0] sm:$0xf0]  ;;  %v1738_v9 = vor.u32 %v1975_v63, %v1735_v0 }
  0x31   :  { %v1397_v16 = vld [vmem:[#allocation9 + $0x40] sm:$0xf]  ;;  %v1961_v18 = vld [vmem:[#allocation9 + $0x26c] sm:$0xf0]  ;;  %1028 = vmatpush.bf16.msrb.mxu1 %v1558_v7  ;;  %v1542_v19 = vor.u32 %v1929_v12, %v1541_v11  ;;  %v1863_v4 = vld [vmem:[#allocation9 + $0x3f0] sm:$0xf0]  ;;  %v1466_v10 = vor.u32 %v1907_v56, %v1463_v2 }
  0x32   :  { %v1669_v17 = vld [vmem:[#allocation9 + $0x260] sm:$0xf]  ;;  %v1893_v20 = vld [vmem:[#allocation9 + $0x4c] sm:$0xf0]  ;;  %1041 = vmatpush.bf16.msrb.mxu2 %v1686_v13  ;;  %v1939_v5 = vld [vmem:[#allocation9 + $0x1c4] sm:$0xf]  ;;  %v1866_v11 = vor.u32 %v2007_v3, %v1863_v4 }
  0x33   :  { %v1797_v21 = vld [vmem:[#allocation9 + $0x360] sm:$0xf]  ;;  %v1993_v22 = vld [vmem:[#allocation9 + $0x36c] sm:$0xf0]  ;;  %v1670_v25 = vor.u32 %v1961_v18, %v1669_v17  ;;  %1054 = vmatpush.bf16.msrb.mxu3 %v1814_v15  ;;  %v1398_v26 = vor.u32 %v1893_v20, %v1397_v16  ;;  %v1591_v6 = vld [vmem:[#allocation9 + $0x1d0] sm:$0xf0] }
  0x34   :  { %v1525_v23 = vld [vmem:[#allocation9 + $0x140] sm:$0xf]  ;;  %v1925_v24 = vld [vmem:[#allocation9 + $0x14c] sm:$0xf0]  ;;  %1016 = vmatpush.bf16.msrb.mxu0 %v1414_v14  ;;  %v1798_v27 = vor.u32 %v1993_v22, %v1797_v21  ;;  %v1903_v12 = vld [vmem:[#allocation9 + $0xa4] sm:$0xf]  ;;  %v1594_v15 = vor.u32 %v1939_v5, %v1591_v6 }
  0x35   :  { %v1381_v28 = vld [vmem:[#allocation9 + $0x20] sm:$0xf]  ;;  %v1957_v30 = vld [vmem:[#allocation9 + $0x24c] sm:$0xf0]  ;;  %1029 = vmatpush.bf16.msrb.mxu1 %v1542_v19  ;;  %v1526_v31 = vor.u32 %v1925_v24, %v1525_v23  ;;  %v1971_v13 = vld [vmem:[#allocation9 + $0x2c4] sm:$0xf] }
  0x36   :  { %v1653_v29 = vld [vmem:[#allocation9 + $0x240] sm:$0xf]  ;;  %v1889_v32 = vld [vmem:[#allocation9 + $0x2c] sm:$0xf0]  ;;  %1042 = vmatpush.bf16.msrb.mxu2 %v1670_v25  ;;  %v1719_v14 = vld [vmem:[#allocation9 + $0x2d0] sm:$0xf0] }
  0x37   :  { %v1781_v33 = vld [vmem:[#allocation9 + $0x340] sm:$0xf]  ;;  %v1989_v34 = vld [vmem:[#allocation9 + $0x34c] sm:$0xf0]  ;;  %v1654_v37 = vor.u32 %v1957_v30, %v1653_v29  ;;  %1055 = vmatpush.bf16.msrb.mxu3 %v1798_v27  ;;  %v1382_v39 = vor.u32 %v1889_v32, %v1381_v28  ;;  %v1447_v16 = vld [vmem:[#allocation9 + $0xb0] sm:$0xf0]  ;;  %v1722_v21 = vor.u32 %v1971_v13, %v1719_v14 }
  0x38   :  { %v1509_v35 = vld [vmem:[#allocation9 + $0x120] sm:$0xf]  ;;  %v1921_v36 = vld [vmem:[#allocation9 + $0x12c] sm:$0xf0]  ;;  %1017 = vmatpush.bf16.msrb.mxu0 %v1398_v26  ;;  %v1782_v40 = vor.u32 %v1989_v34, %v1781_v33  ;;  %v2003_v17 = vld [vmem:[#allocation9 + $0x3c4] sm:$0xf]  ;;  %v1450_v22 = vor.u32 %v1903_v12, %v1447_v16 }
  0x39   :  { %v1365_v38 = vld [vmem:[#allocation9] sm:$0xf]  ;;  %v1885_v41 = vld [vmem:[#allocation9 + $0xc] sm:$0xf0]  ;;  %1030 = vmatpush.bf16.msrb.mxu1 %v1526_v31  ;;  %v1510_v44 = vor.u32 %v1921_v36, %v1509_v35  ;;  %v1847_v18 = vld [vmem:[#allocation9 + $0x3d0] sm:$0xf0] }
  0x3a   :  { %v1637_v42 = vld [vmem:[#allocation9 + $0x220] sm:$0xf]  ;;  %v1953_v43 = vld [vmem:[#allocation9 + $0x22c] sm:$0xf0]  ;;  %1043 = vmatpush.bf16.msrb.mxu2 %v1654_v37  ;;  %v1366_v54 = vor.u32 %v1885_v41, %v1365_v38  ;;  %v1935_v19 = vld [vmem:[#allocation9 + $0x1a4] sm:$0xf]  ;;  %v1850_v23 = vor.u32 %v2003_v17, %v1847_v18 }
  0x3b   :  { %v1493_v45 = vld [vmem:[#allocation9 + $0x100] sm:$0xf]  ;;  %v1985_v47 = vld [vmem:[#allocation9 + $0x32c] sm:$0xf0]  ;;  %v1638_v53 = vor.u32 %v1953_v43, %v1637_v42  ;;  %1056 = vmatpush.bf16.msrb.mxu3 %v1782_v40  ;;  %v1575_v20 = vld [vmem:[#allocation9 + $0x1b0] sm:$0xf0] }
  0x3c   :  { %v1765_v46 = vld [vmem:[#allocation9 + $0x320] sm:$0xf]  ;;  %v1917_v48 = vld [vmem:[#allocation9 + $0x10c] sm:$0xf0]  ;;  %1018 = vmatpush.bf16.msrb.mxu0 %v1382_v39  ;;  %v1578_v24 = vor.u32 %v1935_v19, %v1575_v20  ;;  %v1899_v25 = vld [vmem:[#allocation9 + $0x84] sm:$0xf] }
  0x3d   :  { %v1766_v55 = vor.u32 %v1985_v47, %v1765_v46  ;;  %v1621_v57 = vld [vmem:[#allocation9 + $0x200] sm:$0xf]  ;;  %v1949_v58 = vld [vmem:[#allocation9 + $0x20c] sm:$0xf0]  ;;  %1031 = vmatpush.bf16.msrb.mxu1 %v1510_v44  ;;  %v1494_v60 = vor.u32 %v1917_v48, %v1493_v45  ;;  %v1431_v26 = vld [vmem:[#allocation9 + $0x90] sm:$0xf0] }
  0x3e   :  { %v1749_v59 = vld [vmem:[#allocation9 + $0x300] sm:$0xf]  ;;  %v1981_v62 = vld [vmem:[#allocation9 + $0x30c] sm:$0xf0]  ;;  %1044 = vmatpush.bf16.msrb.mxu2 %v1638_v53  ;;  %v1622_v7 = vor.u32 %v1949_v58, %v1621_v57  ;;  %v1931_v27 = vld [vmem:[#allocation9 + $0x184] sm:$0xf]  ;;  %v1434_v29 = vor.u32 %v1899_v25, %v1431_v26 }
  0x3f   :  { %1057 = vmatpush.bf16.msrb.mxu3 %v1766_v55  ;;  %v1750_v8 = vor.u32 %v1981_v62, %v1749_v59  ;;  %v1559_v28 = vld [vmem:[#allocation9 + $0x190] sm:$0xf0]  ;;  %v1967_v31 = vld [vmem:[#allocation9 + $0x2a4] sm:$0xf] }
  0x40   :  { %1019 = vmatpush.bf16.msrb.mxu0 %v1366_v54  ;;  %v1562_v30 = vor.u32 %v1931_v27, %v1559_v28  ;;  %v1703_v32 = vld [vmem:[#allocation9 + $0x2b0] sm:$0xf0]  ;;  %v1999_v33 = vld [vmem:[#allocation9 + $0x3a4] sm:$0xf]  ;;  %v112_v27 = vld [vmem:[#allocation8] sm:$0xf] }
  0x41   :  { %1032 = vmatpush.bf16.msrb.mxu1 %v1494_v60  ;;  %v1706_v34 = vor.u32 %v1967_v31, %v1703_v32  ;;  %v1831_v35 = vld [vmem:[#allocation9 + $0x3b0] sm:$0xf0]  ;;  %v1895_v37 = vld [vmem:[#allocation9 + $0x64] sm:$0xf]  ;;  %v114_v28 = vperm.slane %v112_v27, 0 }
  0x42   :  { %1045 = vmatpush.bf16.msrb.mxu2 %v1622_v7  ;;  %v1834_v36 = vor.u32 %v1999_v33, %v1831_v35  ;;  %v1415_v38 = vld [vmem:[#allocation9 + $0x70] sm:$0xf0]  ;;  %v1927_v39 = vld [vmem:[#allocation9 + $0x164] sm:$0xf] }
  0x43   :  { %1058 = vmatpush.bf16.msrb.mxu3 %v1750_v8  ;;  %v1418_v40 = vor.u32 %v1895_v37, %v1415_v38  ;;  %v1543_v41 = vld [vmem:[#allocation9 + $0x170] sm:$0xf0]  ;;  %v1963_v43 = vld [vmem:[#allocation9 + $0x284] sm:$0xf]  ;;  %v117_v38 = vperm.slane %v112_v27, 3 }
  0x44   :  { %1064 = vmatpush.bf16.msra.mxu0 %v1482_v61  ;;  %v1546_v42 = vor.u32 %v1927_v39, %v1543_v41  ;;  %v1687_v44 = vld [vmem:[#allocation9 + $0x290] sm:$0xf0]  ;;  %v1995_v45 = vld [vmem:[#allocation9 + $0x384] sm:$0xf] }
  0x45   :  { %1077 = vmatpush.bf16.msra.mxu1 %v1610_v1  ;;  %v1690_v46 = vor.u32 %v1963_v43, %v1687_v44  ;;  %v1815_v47 = vld [vmem:[#allocation9 + $0x390] sm:$0xf0]  ;;  %v1891_v49 = vld [vmem:[#allocation9 + $0x44] sm:$0xf] }
  0x46   :  { %1090 = vmatpush.bf16.msra.mxu2 %v1738_v9  ;;  %v1818_v48 = vor.u32 %v1995_v45, %v1815_v47  ;;  %v1399_v50 = vld [vmem:[#allocation9 + $0x50] sm:$0xf0]  ;;  %v1923_v51 = vld [vmem:[#allocation9 + $0x144] sm:$0xf]  ;;  %v1485_v47 = vld [vmem:[#allocation9 + $0xe8] sm:$0xf] }
  0x47   :  { %1103 = vmatpush.bf16.msra.mxu3 %v1866_v11  ;;  %v1402_v52 = vor.u32 %v1891_v49, %v1399_v50  ;;  %v1527_v53 = vld [vmem:[#allocation9 + $0x150] sm:$0xf0]  ;;  %v1959_v55 = vld [vmem:[#allocation9 + $0x264] sm:$0xf]  ;;  %v1613_v50 = vld [vmem:[#allocation9 + $0x1e8] sm:$0xf] }
  0x48   :  { %1065 = vmatpush.bf16.msra.mxu0 %v1466_v10  ;;  %v1530_v54 = vor.u32 %v1923_v51, %v1527_v53  ;;  %v1671_v56 = vld [vmem:[#allocation9 + $0x270] sm:$0xf0]  ;;  %v1991_v57 = vld [vmem:[#allocation9 + $0x364] sm:$0xf]  ;;  %v1946_v51 = vld [vmem:[#allocation9 + $0x1f4] sm:$0xf0] }
  0x49   :  { %1078 = vmatpush.bf16.msra.mxu1 %v1594_v15  ;;  %v1674_v58 = vor.u32 %v1959_v55, %v1671_v56  ;;  %v1799_v59 = vld [vmem:[#allocation9 + $0x370] sm:$0xf0]  ;;  %v1887_v61 = vld [vmem:[#allocation9 + $0x24] sm:$0xf] }
  0x4a   :  { %1091 = vmatpush.bf16.msra.mxu2 %v1722_v21  ;;  %v1802_v60 = vor.u32 %v1991_v57, %v1799_v59  ;;  %v1383_v62 = vld [vmem:[#allocation9 + $0x30] sm:$0xf0]  ;;  %v1919_v63 = vld [vmem:[#allocation9 + $0x124] sm:$0xf]  ;;  %v1469_v59 = vld [vmem:[#allocation9 + $0xc8] sm:$0xf] }
  0x4b   :  { %1104 = vmatpush.bf16.msra.mxu3 %v1850_v23  ;;  %v1386_v0 = vor.u32 %v1887_v61, %v1383_v62  ;;  %v1511_v1 = vld [vmem:[#allocation9 + $0x130] sm:$0xf0]  ;;  %v1955_v3 = vld [vmem:[#allocation9 + $0x244] sm:$0xf] }
  0x4c   :  { %1066 = vmatpush.bf16.msra.mxu0 %v1450_v22  ;;  %v1514_v2 = vor.u32 %v1919_v63, %v1511_v1  ;;  %v1655_v4 = vld [vmem:[#allocation9 + $0x250] sm:$0xf0]  ;;  %v1987_v5 = vld [vmem:[#allocation9 + $0x344] sm:$0xf]  ;;  %v1597_v63 = vld [vmem:[#allocation9 + $0x1c8] sm:$0xf] }
  0x4d   :  { %1079 = vmatpush.bf16.msra.mxu1 %v1578_v24  ;;  %v1658_v6 = vor.u32 %v1955_v3, %v1655_v4  ;;  %v1783_v7 = vld [vmem:[#allocation9 + $0x350] sm:$0xf0]  ;;  %v1883_v9 = vld [vmem:[#allocation9 + $0x4] sm:$0xf]  ;;  %v1741_v3 = vld [vmem:[#allocation9 + $0x2e8] sm:$0xf] }
  0x4e   :  { %1092 = vmatpush.bf16.msra.mxu2 %v1706_v34  ;;  %v1786_v8 = vor.u32 %v1987_v5, %v1783_v7  ;;  %v1367_v10 = vld [vmem:[#allocation9 + $0x10] sm:$0xf0]  ;;  %v1915_v11 = vld [vmem:[#allocation9 + $0x104] sm:$0xf]  ;;  %v1978_v4 = vld [vmem:[#allocation9 + $0x2f4] sm:$0xf0] }
  0x4f   :  { %1105 = vmatpush.bf16.msra.mxu3 %v1834_v36  ;;  %v1370_v12 = vor.u32 %v1883_v9, %v1367_v10  ;;  %v1495_v13 = vld [vmem:[#allocation9 + $0x110] sm:$0xf0]  ;;  %v1951_v15 = vld [vmem:[#allocation9 + $0x224] sm:$0xf]  ;;  %v116_v36 = vperm.slane %v112_v27, 2 }
  0x50   :  { %1067 = vmatpush.bf16.msra.mxu0 %v1434_v29  ;;  %v1498_v14 = vor.u32 %v1915_v11, %v1495_v13  ;;  %v1639_v16 = vld [vmem:[#allocation9 + $0x230] sm:$0xf0]  ;;  %v1983_v17 = vld [vmem:[#allocation9 + $0x324] sm:$0xf]  ;;  %v115_v29 = vperm.slane %v112_v27, 1  ;;  %v1742_v13 = vor.u32 %v1978_v4, %v1741_v3 }
  0x51   :  { %1080 = vmatpush.bf16.msra.mxu1 %v1562_v30  ;;  %v1767_v18 = vld [vmem:[#allocation9 + $0x330] sm:$0xf0]  ;;  %v1642_v19 = vor.u32 %v1951_v15, %v1639_v16  ;;  %v1947_v21 = vld [vmem:[#allocation9 + $0x204] sm:$0xf]  ;;  %v1869_v5 = vld [vmem:[#allocation9 + $0x3e8] sm:$0xf] }
  0x52   :  { %1093 = vmatpush.bf16.msra.mxu2 %v1690_v46  ;;  %v1770_v20 = vor.u32 %v1983_v17, %v1767_v18  ;;  %v1623_v22 = vld [vmem:[#allocation9 + $0x210] sm:$0xf0]  ;;  %v1979_v24 = vld [vmem:[#allocation9 + $0x304] sm:$0xf]  ;;  %v2010_v7 = vld [vmem:[#allocation9 + $0x3f4] sm:$0xf0] }
  0x53   :  { %1106 = vmatpush.bf16.msra.mxu3 %v1818_v48  ;;  %v1626_v23 = vor.u32 %v1947_v21, %v1623_v22  ;;  %v1751_v25 = vld [vmem:[#allocation9 + $0x310] sm:$0xf0]  ;;  %v1914_v48 = vld [vmem:[#allocation9 + $0xf4] sm:$0xf0]  ;;  %v1581_v10 = vld [vmem:[#allocation9 + $0x1a8] sm:$0xf]  ;;  %v1870_v16 = vor.u32 %v2010_v7, %v1869_v5 }
  0x54   :  { %1068 = vmatpush.bf16.msra.mxu0 %v1418_v40  ;;  %v1754_v26 = vor.u32 %v1979_v24, %v1751_v25  ;;  %v1486_v55 = vor.u32 %v1914_v48, %v1485_v47  ;;  %v1906_v9 = vld [vmem:[#allocation9 + $0xb4] sm:$0xf0]  ;;  %v1725_v18 = vld [vmem:[#allocation9 + $0x2c8] sm:$0xf] }
  0x55   :  { %1081 = vmatpush.bf16.msra.mxu1 %v1546_v42  ;;  %v1938_v11 = vld [vmem:[#allocation9 + $0x1b4] sm:$0xf0]  ;;  %v1437_v24 = vld [vmem:[#allocation9 + $0x88] sm:$0xf] }
  0x56   :  { %1094 = vmatpush.bf16.msra.mxu2 %v1674_v58  ;;  %v1614_v58 = vor.u32 %v1946_v51, %v1613_v50  ;;  %v1582_v22 = vor.u32 %v1938_v11, %v1581_v10  ;;  %v1902_v25 = vld [vmem:[#allocation9 + $0x94] sm:$0xf0]  ;;  %v1405_v48 = vld [vmem:[#allocation9 + $0x48] sm:$0xf] }
  0x57   :  { %1107 = vmatpush.bf16.msra.mxu3 %v1802_v60  ;;  %v1910_v60 = vld [vmem:[#allocation9 + $0xd4] sm:$0xf0]  ;;  %v1533_v50 = vld [vmem:[#allocation9 + $0x148] sm:$0xf] }
  0x58   :  { %1069 = vmatpush.bf16.msra.mxu0 %v1402_v52  ;;  %v1934_v27 = vld [vmem:[#allocation9 + $0x194] sm:$0xf0]  ;;  %v1661_v4 = vld [vmem:[#allocation9 + $0x248] sm:$0xf] }
  0x59   :  { %1082 = vmatpush.bf16.msra.mxu1 %v1530_v54  ;;  %v1998_v47 = vld [vmem:[#allocation9 + $0x394] sm:$0xf0]  ;;  %v1373_v10 = vld [vmem:[#allocation9 + $0x8] sm:$0xf] }
  0x5a   :  { %1095 = vmatpush.bf16.msra.mxu2 %v1658_v6  ;;  %v1926_v51 = vld [vmem:[#allocation9 + $0x154] sm:$0xf0] }
  0x5b   :  { %1108 = vmatpush.bf16.msra.mxu3 %v1786_v8  ;;  %v1453_v8 = vld [vmem:[#allocation9 + $0xa8] sm:$0xf]  ;;  %v1958_v5 = vld [vmem:[#allocation9 + $0x254] sm:$0xf0] }
  0x5c   :  { %1070 = vmatpush.bf16.msra.mxu0 %v1386_v0  ;;  %v1942_v0 = vld [vmem:[#allocation9 + $0x1d4] sm:$0xf0]  ;;  %v1454_v17 = vor.u32 %v1906_v9, %v1453_v8 }
  0x5d   :  { %1083 = vmatpush.bf16.msra.mxu1 %v1514_v2  ;;  %v1470_v2 = vor.u32 %v1910_v60, %v1469_v59  ;;  %v1598_v6 = vor.u32 %v1942_v0, %v1597_v63  ;;  %v1805_v59 = vld [vmem:[#allocation9 + $0x368] sm:$0xf]  ;;  %v1994_v60 = vld [vmem:[#allocation9 + $0x374] sm:$0xf0] }
  0x5e   :  { %1096 = vmatpush.bf16.msra.mxu2 %v1642_v19  ;;  %v1974_v19 = vld [vmem:[#allocation9 + $0x2d4] sm:$0xf0]  ;;  %v1517_v0 = vld [vmem:[#allocation9 + $0x128] sm:$0xf]  ;;  %v1806_v3 = vor.u32 %v1994_v60, %v1805_v59  ;;  %v2004_v59 = vld [vmem:[#allocation9 + $0x3cc] sm:$0xf] }
  0x5f   :  { %1109 = vmatpush.bf16.msra.mxu3 %v1770_v20  ;;  %v1853_v20 = vld [vmem:[#allocation9 + $0x3c8] sm:$0xf]  ;;  %v1890_v63 = vld [vmem:[#allocation9 + $0x34] sm:$0xf0]  ;;  %v1855_v60 = vld [vmem:[#allocation9 + $0x3d8] sm:$0xf0] }
  0x60   :  { %1071 = vmatpush.bf16.msra.mxu0 %v1370_v12  ;;  %v1990_v9 = vld [vmem:[#allocation9 + $0x354] sm:$0xf0] }
  0x61   :  { %1084 = vmatpush.bf16.msra.mxu1 %v1498_v14  ;;  %v1886_v11 = vld [vmem:[#allocation9 + $0x14] sm:$0xf0] }
  0x62   :  { %1097 = vmatpush.bf16.msra.mxu2 %v1626_v23  ;;  %v2006_v23 = vld [vmem:[#allocation9 + $0x3d4] sm:$0xf0] }
  0x63   :  { %1110 = vmatpush.bf16.msra.mxu3 %v1754_v26  ;;  %v1565_v26 = vld [vmem:[#allocation9 + $0x188] sm:$0xf] }
  0xa0   :  { %v175_v30 = vpop.f32.mrf.mxu0 }
  0xa1   :  { %v176_v31 = vadd.f32 %v175_v30, %v114_v28  ;;  %v188_v32 = vpop.f32.mrf.mxu1  ;;  %v1726_v28 = vor.u32 %v1974_v19, %v1725_v18  ;;  %v1438_v30 = vor.u32 %v1902_v25, %v1437_v24  ;;  %v1944_v18 = vld [vmem:[#allocation9 + $0x1ec] sm:$0xf]  ;;  %v1615_v19 = vld [vmem:[#allocation9 + $0x1f8] sm:$0xf0]  ;;  %v1374_v24 = vor.u32 %v1886_v11, %v1373_v10 }
  0xa2   :  { %v189_v33 = vadd.f32 %v188_v32, %v115_v29  ;;  %v1854_v29 = vor.u32 %v2006_v23, %v1853_v20  ;;  %v1970_v32 = vld [vmem:[#allocation9 + $0x2b4] sm:$0xf0]  ;;  %v1896_v10 = vld [vmem:[#allocation9 + $0x6c] sm:$0xf]  ;;  %v1423_v11 = vld [vmem:[#allocation9 + $0x78] sm:$0xf0] }
  0xa3   :  { %v218_v34 = vpack.c.bf16 %v176_v31, %v176_v31  ;;  %v1709_v31 = vld [vmem:[#allocation9 + $0x2a8] sm:$0xf]  ;;  %v1954_v23 = vld [vmem:[#allocation9 + $0x234] sm:$0xf0] }
  0xa4   :  { %v219_v35 = vpack.c.bf16 %v189_v33, %v189_v33  ;;  %v1566_v33 = vor.u32 %v1934_v27, %v1565_v26  ;;  %v1773_v26 = vld [vmem:[#allocation9 + $0x328] sm:$0xf]  ;;  %v1986_v27 = vld [vmem:[#allocation9 + $0x334] sm:$0xf0] }
  0xa5   :  { %v222_v37 = vunpack.c.l.bf16 %v218_v34  ;;  %v1837_v34 = vld [vmem:[#allocation9 + $0x3a8] sm:$0xf] }
  0xa6   :  { %v223_v39 = vunpack.c.l.bf16 %v219_v35  ;;  %v2002_v35 = vld [vmem:[#allocation9 + $0x3b4] sm:$0xf0] }
  0xa7   :  { %2021 = vtanh.f32 %v222_v37  ;;  %v1898_v37 = vld [vmem:[#allocation9 + $0x74] sm:$0xf0] }
  0xa8   :  { %v201_v40 = vpop.f32.mrf.mxu2  ;;  %2023 = vtanh.f32 %v223_v39  ;;  %v177_v43 = vpop.f32.mrf.mxu0  ;;  %v1930_v39 = vld [vmem:[#allocation9 + $0x174] sm:$0xf0] }
  0xa9   :  { %v202_v41 = vadd.f32 %v201_v40, %v116_v36  ;;  %v214_v42 = vpop.f32.mrf.mxu3  ;;  %v190_v45 = vpop.f32.mrf.mxu1  ;;  %v1421_v36 = vld [vmem:[#allocation9 + $0x68] sm:$0xf]  ;;  %v1710_v40 = vor.u32 %v1970_v32, %v1709_v31  ;;  %v1966_v43 = vld [vmem:[#allocation9 + $0x294] sm:$0xf0]  ;;  %v1471_v32 = vld [vmem:[#allocation9 + $0xd8] sm:$0xf0] }
  0xaa   :  { %v215_v44 = vadd.f32 %v214_v42, %v117_v38  ;;  %v1549_v38 = vld [vmem:[#allocation9 + $0x168] sm:$0xf] }
  0xab   :  { %v220_v46 = vpack.c.bf16 %v202_v41, %v202_v41  ;;  %v1838_v41 = vor.u32 %v2002_v35, %v1837_v34  ;;  %v1693_v42 = vld [vmem:[#allocation9 + $0x288] sm:$0xf]  ;;  %v1550_v45 = vor.u32 %v1930_v39, %v1549_v38  ;;  %v1599_v34 = vld [vmem:[#allocation9 + $0x1d8] sm:$0xf0]  ;;  %v1774_v35 = vor.u32 %v1986_v27, %v1773_v26  ;;  %v1982_v39 = vld [vmem:[#allocation9 + $0x314] sm:$0xf0] }
  0xac   :  { %v221_v49 = vpack.c.bf16 %v215_v44, %v215_v44  ;;  %v1422_v44 = vor.u32 %v1898_v37, %v1421_v36  ;;  %v1629_v36 = vld [vmem:[#allocation9 + $0x208] sm:$0xf]  ;;  %v1950_v37 = vld [vmem:[#allocation9 + $0x214] sm:$0xf0]  ;;  %v1924_v26 = vld [vmem:[#allocation9 + $0x14c] sm:$0xf] }
  0xad   :  { %v224_v52 = vunpack.c.l.bf16 %v220_v46  ;;  %v2022_v53 = vpop.eup %2021  ;;  %v1821_v46 = vld [vmem:[#allocation9 + $0x388] sm:$0xf]  ;;  %v1535_v27 = vld [vmem:[#allocation9 + $0x158] sm:$0xf0] }
  0xae   :  { %v225_v54 = vunpack.c.l.bf16 %v221_v49  ;;  %v2024_v56 = vpop.eup %2023  ;;  %v2260_v57 = vpack.c.bf16 %v2022_v53, %v2022_v53  ;;  %v1894_v49 = vld [vmem:[#allocation9 + $0x54] sm:$0xf0]  ;;  %v1822_v53 = vor.u32 %v1998_v47, %v1821_v46  ;;  %v1757_v38 = vld [vmem:[#allocation9 + $0x308] sm:$0xf]  ;;  %v1904_v46 = vld [vmem:[#allocation9 + $0xac] sm:$0xf]  ;;  %v1630_v47 = vor.u32 %v1950_v37, %v1629_v36 }
  0xaf   :  { %2025 = vtanh.f32 %v224_v52  ;;  %v2262_v61 = vpack.c.bf16 %v2024_v56, %v2024_v56  ;;  %v1694_v52 = vor.u32 %v1966_v43, %v1693_v42  ;;  %v1406_v56 = vor.u32 %v1894_v49, %v1405_v48  ;;  %v1455_v48 = vld [vmem:[#allocation9 + $0xb8] sm:$0xf0]  ;;  %v1936_v49 = vld [vmem:[#allocation9 + $0x1ac] sm:$0xf] }
  0xb0   :  { %2027 = vtanh.f32 %v225_v54  ;;  %v203_v62 = vpop.f32.mrf.mxu2  ;;  %1020 = vmatmul.bf16.vlgmr.msrb.gmra.mxu0 %v2260_v57  ;;  %v1677_v54 = vld [vmem:[#allocation9 + $0x268] sm:$0xf]  ;;  %v1888_v36 = vld [vmem:[#allocation9 + $0x2c] sm:$0xf]  ;;  %v1391_v37 = vld [vmem:[#allocation9 + $0x38] sm:$0xf0] }
  0xb1   :  { %v216_v1 = vpop.f32.mrf.mxu3  ;;  %1033 = vmatmul.bf16.vlgmr.msrb.gmra.mxu1 %v2262_v61  ;;  %1116 = vmatpush.bf16.msrb.mxu0 %v1486_v55  ;;  %v1962_v55 = vld [vmem:[#allocation9 + $0x274] sm:$0xf0]  ;;  %v1389_v62 = vld [vmem:[#allocation9 + $0x28] sm:$0xf] }
  0xb2   :  { %1129 = vmatpush.bf16.msrb.mxu1 %v1614_v58  ;;  %v1534_v58 = vor.u32 %v1926_v51, %v1533_v50  ;;  %v1922_v1 = vld [vmem:[#allocation9 + $0x134] sm:$0xf0]  ;;  %v1390_v7 = vor.u32 %v1890_v63, %v1389_v62  ;;  %v1583_v50 = vld [vmem:[#allocation9 + $0x1b8] sm:$0xf0]  ;;  %v1758_v51 = vor.u32 %v1982_v39, %v1757_v38  ;;  %v1900_v62 = vld [vmem:[#allocation9 + $0x8c] sm:$0xf] }
  0xb3   :  { %v1518_v8 = vor.u32 %v1922_v1, %v1517_v0  ;;  %v1439_v63 = vld [vmem:[#allocation9 + $0x98] sm:$0xf0]  ;;  %v1932_v0 = vld [vmem:[#allocation9 + $0x18c] sm:$0xf] }
  0xb4   :  { %v1567_v1 = vld [vmem:[#allocation9 + $0x198] sm:$0xf0]  ;;  %v1920_v38 = vld [vmem:[#allocation9 + $0x12c] sm:$0xf] }
  0xb5   :  { %v2026_v12 = vpop.eup %2025  ;;  %1117 = vmatpush.bf16.msrb.mxu0 %v1470_v2  ;;  %v1678_v2 = vor.u32 %v1962_v55, %v1677_v54  ;;  %v1972_v54 = vld [vmem:[#allocation9 + $0x2cc] sm:$0xf]  ;;  %v1727_v55 = vld [vmem:[#allocation9 + $0x2d8] sm:$0xf0] }
  0xb6   :  { %v2028_v14 = vpop.eup %2027  ;;  %v2266_v15 = vpack.c.bf16 %v2026_v12, %v2026_v12  ;;  %1130 = vmatpush.bf16.msrb.mxu1 %v1598_v6  ;;  %v1789_v6 = vld [vmem:[#allocation9 + $0x348] sm:$0xf]  ;;  %v1519_v39 = vld [vmem:[#allocation9 + $0x138] sm:$0xf0] }
  0xb7   :  { %v2268_v21 = vpack.c.bf16 %v2028_v14, %v2028_v14  ;;  %v1501_v12 = vld [vmem:[#allocation9 + $0x108] sm:$0xf]  ;;  %v1912_v14 = vld [vmem:[#allocation9 + $0xec] sm:$0xf]  ;;  %v1790_v20 = vor.u32 %v1990_v9, %v1789_v6  ;;  %v1442_v6 = vor.u32 %v1900_v62, %v1439_v63  ;;  %v1839_v9 = vld [vmem:[#allocation9 + $0x3b8] sm:$0xf0] }
  0xb8   :  { %1046 = vmatmul.bf16.vlgmr.msrb.gmra.mxu2 %v2266_v15 }
  0xb9   :  { %1059 = vmatmul.bf16.vlgmr.msrb.gmra.mxu3 %v2268_v21  ;;  %1142 = vmatpush.bf16.msrb.mxu2 %v1742_v13  ;;  %v1918_v13 = vld [vmem:[#allocation9 + $0x114] sm:$0xf0] }
  0xba   :  { %1155 = vmatpush.bf16.msrb.mxu3 %v1870_v16  ;;  %1118 = vmatpush.bf16.msrb.mxu0 %v1454_v17  ;;  %v1662_v16 = vor.u32 %v1958_v5, %v1661_v4  ;;  %v1487_v17 = vld [vmem:[#allocation9 + $0xf8] sm:$0xf0]  ;;  %v1502_v25 = vor.u32 %v1918_v13, %v1501_v12  ;;  %v1968_v4 = vld [vmem:[#allocation9 + $0x2ac] sm:$0xf] }
  0xbb   :  { %1131 = vmatpush.bf16.msrb.mxu1 %v1582_v22  ;;  %v1645_v22 = vld [vmem:[#allocation9 + $0x228] sm:$0xf]  ;;  %v1711_v5 = vld [vmem:[#allocation9 + $0x2b8] sm:$0xf0]  ;;  %v1928_v12 = vld [vmem:[#allocation9 + $0x16c] sm:$0xf] }
  0xbc   :  { %v1646_v31 = vor.u32 %v1954_v23, %v1645_v22  ;;  %v1551_v13 = vld [vmem:[#allocation9 + $0x178] sm:$0xf0]  ;;  %v1996_v22 = vld [vmem:[#allocation9 + $0x38c] sm:$0xf] }
  0xbd   :  { %1143 = vmatpush.bf16.msrb.mxu2 %v1726_v28  ;;  %v1490_v28 = vor.u32 %v1912_v14, %v1487_v17  ;;  %v1714_v14 = vor.u32 %v1968_v4, %v1711_v5  ;;  %v1964_v17 = vld [vmem:[#allocation9 + $0x28c] sm:$0xf]  ;;  %v1823_v23 = vld [vmem:[#allocation9 + $0x398] sm:$0xf0] }
  0xbe   :  { %1156 = vmatpush.bf16.msrb.mxu3 %v1854_v29  ;;  %1119 = vmatpush.bf16.msrb.mxu0 %v1438_v30  ;;  %v1618_v29 = vor.u32 %v1944_v18, %v1615_v19  ;;  %v1908_v30 = vld [vmem:[#allocation9 + $0xcc] sm:$0xf]  ;;  %v1695_v18 = vld [vmem:[#allocation9 + $0x298] sm:$0xf0]  ;;  %v1426_v19 = vor.u32 %v1896_v10, %v1423_v11 }
  0xbf   :  { %1132 = vmatpush.bf16.msrb.mxu1 %v1566_v33  ;;  %v1940_v33 = vld [vmem:[#allocation9 + $0x1cc] sm:$0xf]  ;;  %v1474_v42 = vor.u32 %v1908_v30, %v1471_v32 }
  0xc0   :  { %1072 = vmatmul.bf16.vlgmr.msra.gmra.mxu0 %v2260_v57  ;;  %v1602_v43 = vor.u32 %v1940_v33, %v1599_v34  ;;  %v1960_v30 = vld [vmem:[#allocation9 + $0x26c] sm:$0xf]  ;;  %v1538_v33 = vor.u32 %v1924_v26, %v1535_v27 }
  0xc1   :  { %1144 = vmatpush.bf16.msrb.mxu2 %v1710_v40  ;;  %1085 = vmatmul.bf16.vlgmr.msra.gmra.mxu1 %v2262_v61  ;;  %v1976_v40 = vld [vmem:[#allocation9 + $0x2ec] sm:$0xf] }
  0xc2   :  { %1157 = vmatpush.bf16.msrb.mxu3 %v1838_v41  ;;  %1120 = vmatpush.bf16.msrb.mxu0 %v1422_v44  ;;  %v1743_v41 = vld [vmem:[#allocation9 + $0x2f8] sm:$0xf0]  ;;  %v2008_v44 = vld [vmem:[#allocation9 + $0x3ec] sm:$0xf] }
  0xc3   :  { %1133 = vmatpush.bf16.msrb.mxu1 %v1550_v45  ;;  %v1871_v45 = vld [vmem:[#allocation9 + $0x3f8] sm:$0xf0]  ;;  %v1992_v34 = vld [vmem:[#allocation9 + $0x36c] sm:$0xf] }
  0xc5   :  { %1145 = vmatpush.bf16.msrb.mxu2 %v1694_v52  ;;  %v1746_v52 = vor.u32 %v1976_v40, %v1743_v41 }
  0xc6   :  { %1158 = vmatpush.bf16.msrb.mxu3 %v1822_v53  ;;  %1121 = vmatpush.bf16.msrb.mxu0 %v1406_v56  ;;  %v1874_v53 = vor.u32 %v2008_v44, %v1871_v45  ;;  %v1458_v56 = vor.u32 %v1904_v46, %v1455_v48  ;;  %v1394_v44 = vor.u32 %v1888_v36, %v1391_v37  ;;  %v1988_v46 = vld [vmem:[#allocation9 + $0x34c] sm:$0xf] }
  0xc7   :  { %1134 = vmatpush.bf16.msrb.mxu1 %v1534_v58  ;;  %v1586_v58 = vor.u32 %v1936_v49, %v1583_v50  ;;  %v1522_v45 = vor.u32 %v1920_v38, %v1519_v39  ;;  %v1884_v48 = vld [vmem:[#allocation9 + $0xc] sm:$0xf]  ;;  %v1375_v49 = vld [vmem:[#allocation9 + $0x18] sm:$0xf0] }
  0xc8   :  { %1098 = vmatmul.bf16.vlgmr.msra.gmra.mxu2 %v2266_v15  ;;  %v1916_v50 = vld [vmem:[#allocation9 + $0x10c] sm:$0xf] }
  0xc9   :  { %1111 = vmatmul.bf16.vlgmr.msra.gmra.mxu3 %v2268_v21  ;;  %1146 = vmatpush.bf16.msrb.mxu2 %v1678_v2  ;;  %v1730_v2 = vor.u32 %v1972_v54, %v1727_v55  ;;  %v1952_v54 = vld [vmem:[#allocation9 + $0x22c] sm:$0xf]  ;;  %v1647_v55 = vld [vmem:[#allocation9 + $0x238] sm:$0xf0] }
  0xca   :  { %1159 = vmatpush.bf16.msrb.mxu3 %v1806_v3  ;;  %1122 = vmatpush.bf16.msrb.mxu0 %v1390_v7  ;;  %v1858_v3 = vor.u32 %v2004_v59, %v1855_v60  ;;  %v1570_v7 = vor.u32 %v1932_v0, %v1567_v1  ;;  %v1984_v59 = vld [vmem:[#allocation9 + $0x32c] sm:$0xf]  ;;  %v1775_v60 = vld [vmem:[#allocation9 + $0x338] sm:$0xf0]  ;;  %v1650_v62 = vor.u32 %v1952_v54, %v1647_v55 }
  0xcb   :  { %1135 = vmatpush.bf16.msrb.mxu1 %v1518_v8  ;;  %v2000_v8 = vld [vmem:[#allocation9 + $0x3ac] sm:$0xf]  ;;  %v1778_v63 = vor.u32 %v1984_v59, %v1775_v60  ;;  %v1631_v1 = vld [vmem:[#allocation9 + $0x218] sm:$0xf0] }
  0xcc   :  { %v1948_v0 = vld [vmem:[#allocation9 + $0x20c] sm:$0xf] }
  0xcd   :  { %1147 = vmatpush.bf16.msrb.mxu2 %v1662_v16  ;;  %v1842_v16 = vor.u32 %v2000_v8, %v1839_v9  ;;  %v1634_v4 = vor.u32 %v1948_v0, %v1631_v1  ;;  %v1237_v0 = vld [vmem:[#allocation2] sm:$0x1] }
  0xce   :  { %1160 = vmatpush.bf16.msrb.mxu3 %v1790_v20  ;;  %1123 = vmatpush.bf16.msrb.mxu0 %v1374_v24  ;;  %v1554_v20 = vor.u32 %v1928_v12, %v1551_v13  ;;  %v1892_v24 = vld [vmem:[#allocation9 + $0x4c] sm:$0xf] }
  0xcf   :  { %1136 = vmatpush.bf16.msrb.mxu1 %v1502_v25  ;;  %v1407_v25 = vld [vmem:[#allocation9 + $0x58] sm:$0xf0] }
  0xd0   :  { %v1410_v32 = vor.u32 %v1892_v24, %v1407_v25 }
  0xd1   :  { %1148 = vmatpush.bf16.msrb.mxu2 %v1646_v31  ;;  %1124 = vmatmul.bf16.vlgmr.msrb.gmra.mxu0 %v2260_v57  ;;  %v1679_v31 = vld [vmem:[#allocation9 + $0x278] sm:$0xf0] }
  0xd2   :  { %1168 = vmatpush.bf16.msra.mxu0 %v1490_v28  ;;  %1161 = vmatpush.bf16.msrb.mxu3 %v1774_v35  ;;  %v1698_v28 = vor.u32 %v1964_v17, %v1695_v18  ;;  %v1807_v35 = vld [vmem:[#allocation9 + $0x378] sm:$0xf0]  ;;  %v1682_v40 = vor.u32 %v1960_v30, %v1679_v31 }
  0xd3   :  { %1181 = vmatpush.bf16.msra.mxu1 %v1618_v29  ;;  %v1826_v29 = vor.u32 %v1996_v22, %v1823_v23  ;;  %v1810_v41 = vor.u32 %v1992_v34, %v1807_v35 }
  0xd4   :  { %1137 = vmatmul.bf16.vlgmr.msrb.gmra.mxu1 %v2262_v61 }
  0xd5   :  { %1149 = vmatpush.bf16.msrb.mxu2 %v1630_v47  ;;  %v1791_v47 = vld [vmem:[#allocation9 + $0x358] sm:$0xf0] }
  0xd6   :  { %1169 = vmatpush.bf16.msra.mxu0 %v1474_v42  ;;  %1162 = vmatpush.bf16.msrb.mxu3 %v1758_v51  ;;  %v1956_v42 = vld [vmem:[#allocation9 + $0x24c] sm:$0xf]  ;;  %v1503_v51 = vld [vmem:[#allocation9 + $0x118] sm:$0xf0] }
  0xd7   :  { %1182 = vmatpush.bf16.msra.mxu1 %v1602_v43  ;;  %v1663_v43 = vld [vmem:[#allocation9 + $0x258] sm:$0xf0] }
  0xd8   :  { %1150 = vmatmul.bf16.vlgmr.msrb.gmra.mxu2 %v2266_v15 }
  0xd9   :  { %1194 = vmatpush.bf16.msra.mxu2 %v1746_v52  ;;  %1163 = vmatmul.bf16.vlgmr.msrb.gmra.mxu3 %v2268_v21  ;;  %v1666_v52 = vor.u32 %v1956_v42, %v1663_v43 }
  0xda   :  { %1207 = vmatpush.bf16.msra.mxu3 %v1874_v53  ;;  %1170 = vmatpush.bf16.msra.mxu0 %v1458_v56  ;;  %v1794_v53 = vor.u32 %v1988_v46, %v1791_v47  ;;  %v1378_v56 = vor.u32 %v1884_v48, %v1375_v49 }
  0xdb   :  { %1183 = vmatpush.bf16.msra.mxu1 %v1586_v58  ;;  %v1506_v58 = vor.u32 %v1916_v50, %v1503_v51  ;;  %v1236_v51 = vld [vmem:[#allocation11] sm:$0xf] }
  0xdc   :  { %1245 = vst [vmem:[#allocation1] ss:$9 sm:$0xff] %v1236_v51 }
  0xdd   :  { %1195 = vmatpush.bf16.msra.mxu2 %v1730_v2  ;;  %v1980_v2 = vld [vmem:[#allocation9 + $0x30c] sm:$0xf] }
  0xde   :  { %1208 = vmatpush.bf16.msra.mxu3 %v1858_v3  ;;  %1171 = vmatpush.bf16.msra.mxu0 %v1442_v6  ;;  %v1759_v3 = vld [vmem:[#allocation9 + $0x318] sm:$0xf0]  ;;  %v2287_v6 = vld [vmem:[%s2300_s4] sm:$0xf]  ;;  %s2197_s4 = smov [#allocation12]  }
  0xdf   :  { %1184 = vmatpush.bf16.msra.mxu1 %v1570_v7  ;;  %v1762_v5 = vor.u32 %v1980_v2, %v1759_v3  ;;  %v364_v9 = vperm.slane %v2287_v6, 0  ;;  %v366_v37 = vperm.slane %v2287_v6, 2  ;;  %v2196_v2 = vmov 0   ;;  %s1313_s26 = sshll.u32 %s2197_s4, 4  ;;  %s1314_s26 = int_to_ptr.vmem [resolvable:$true] %s1313_s26 }
  0xe0   :  { %2020 = vset.pattern.permute.xlu0 %v2196_v2 }
  0xe1   :  { %1196 = vmatpush.bf16.msra.mxu2 %v1714_v14  ;;  %1240 = vperm.xlu0 %2020, %v1237_v0  }
  0xe2   :  { %1209 = vmatpush.bf16.msra.mxu3 %v1842_v16  ;;  %1172 = vmatpush.bf16.msra.mxu0 %v1426_v19  ;;  %v365_v19 = vperm.slane %v2287_v6, 1 }
  0xe3   :  { %1185 = vmatpush.bf16.msra.mxu1 %v1554_v20  ;;  %v1246_v60 = vld [vmem:[#allocation1] sm:$0xff]  ;;  %v1248_v1 = vld [vmem:[#allocation1 + $0x12] sm:$0xff] }
  0xe5   :  { %1197 = vmatpush.bf16.msra.mxu2 %v1698_v28 }
  0xe6   :  { %1210 = vmatpush.bf16.msra.mxu3 %v1826_v29  ;;  %1173 = vmatpush.bf16.msra.mxu0 %v1410_v32 }
  0xe7   :  { %1186 = vmatpush.bf16.msra.mxu1 %v1538_v33 }
  0xe9   :  { %1198 = vmatpush.bf16.msra.mxu2 %v1682_v40 }
  0xea   :  { %1211 = vmatpush.bf16.msra.mxu3 %v1810_v41  ;;  %1174 = vmatpush.bf16.msra.mxu0 %v1394_v44 }
  0xeb   :  { %1187 = vmatpush.bf16.msra.mxu1 %v1522_v45 }
  0xed   :  { %1199 = vmatpush.bf16.msra.mxu2 %v1666_v52 }
  0xee   :  { %1212 = vmatpush.bf16.msra.mxu3 %v1794_v53  ;;  %1175 = vmatpush.bf16.msra.mxu0 %v1378_v56 }
  0xef   :  { %1188 = vmatpush.bf16.msra.mxu1 %v1506_v58 }
  0xf1   :  { %1200 = vmatpush.bf16.msra.mxu2 %v1650_v62  ;;  %1176 = vmatmul.bf16.vlgmr.msra.gmra.mxu0 %v2260_v57  ;;  %v367_v62 = vperm.slane %v2287_v6, 3 }
  0xf2   :  { %1213 = vmatpush.bf16.msra.mxu3 %v1778_v63  ;;  %1189 = vmatmul.bf16.vlgmr.msra.gmra.mxu1 %v2262_v61  ;;  %v1247_v63 = vld [vmem:[#allocation1 + $0x9] sm:$0xff] }
  0xf5   :  { %1201 = vmatpush.bf16.msra.mxu2 %v1634_v4 }
  0xf6   :  { %1214 = vmatpush.bf16.msra.mxu3 %v1762_v5 }
  0xf8   :  { %1202 = vmatmul.bf16.vlgmr.msra.gmra.mxu2 %v2266_v15 }
  0xf9   :  { %1215 = vmatmul.bf16.vlgmr.msra.gmra.mxu3 %v2268_v21 }
 0x12d   :  { %v1021_v7 = vpop.f32.mrf.mxu0 }
 0x12e   :  { %v1034_v8 = vpop.f32.mrf.mxu1  ;;  %v1022_v10 = vadd.f32 %v1021_v7, %v364_v9 }
 0x130   :  { %v1035_v12 = vadd.f32 %v1034_v8, %v1022_v10 }
 0x135   :  { %v1023_v57 = vpop.f32.mrf.mxu0 }
 0x136   :  { %v1036_v11 = vpop.f32.mrf.mxu1 }
 0x13b   :  { %v1047_v61 = vpop.f32.mrf.mxu2 }
 0x13c   :  { %v1048_v13 = vadd.f32 %v1047_v61, %v1035_v12  ;;  %v1060_v14 = vpop.f32.mrf.mxu3 }
 0x13d   :  { %v1073_v15 = vpop.f32.mrf.mxu0 }
 0x13e   :  { %v1061_v16 = vadd.f32 %v1060_v14, %v1048_v13  ;;  %v1086_v17 = vpop.f32.mrf.mxu1  ;;  %v1074_v23 = vadd.f32 %v1073_v15, %v365_v19 }
 0x140   :  { %v1220_v21 = vpack.c.bf16 %v1061_v16, %v1061_v16  ;;  %v1087_v27 = vadd.f32 %v1086_v17, %v1074_v23  ;;  %v1249_v16 = vld [vmem:[#allocation1 + $0x1b] sm:$0xff] }
 0x142   :  { %v1224_v18 = vunpack.c.l.bf16 %v1220_v21 }
 0x143   :  { %v1049_v20 = vpop.f32.mrf.mxu2 }
 0x144   :  { %2029 = vtanh.f32 %v1224_v18  ;;  %v1062_v22 = vpop.f32.mrf.mxu3 }
 0x145   :  { %v1075_v24 = vpop.f32.mrf.mxu0 }
 0x146   :  { %v1088_v25 = vpop.f32.mrf.mxu1 }
 0x14a   :  { %v2030_v26 = vpop.eup %2029 }
 0x14b   :  { %v1232_v28 = vpack.c.bf16 %v2030_v26, %v2030_v26  ;;  %v1099_v29 = vpop.f32.mrf.mxu2 }
 0x14c   :  { %v1100_v30 = vadd.f32 %v1099_v29, %v1087_v27  ;;  %v1112_v31 = vpop.f32.mrf.mxu3 }
 0x14d   :  { %1261 = vmatpush.bf16.xpose.msrb.mxu0 %v1232_v28 }
 0x14e   :  { %v1113_v32 = vadd.f32 %v1112_v31, %v1100_v30  ;;  %v1125_v33 = vpop.f32.mrf.mxu0 }
 0x14f   :  { %v1126_v40 = vadd.f32 %v1125_v33, %v366_v37 }
 0x150   :  { %v1221_v34 = vpack.c.bf16 %v1113_v32, %v1113_v32 }
 0x151   :  { %v1138_v35 = vpop.f32.mrf.mxu1 }
 0x152   :  { %v1225_v36 = vunpack.c.l.bf16 %v1221_v34  ;;  %v1139_v45 = vadd.f32 %v1138_v35, %v1126_v40 }
 0x153   :  { %v1101_v38 = vpop.f32.mrf.mxu2  ;;  %v1241_v22 = vpop.permute.xlu0 %1240 }
 0x154   :  { %2031 = vtanh.f32 %v1225_v36  ;;  %v1114_v39 = vpop.f32.mrf.mxu3  ;;  %1262 = vmatmul.bf16.vlgmr.msrb.gmra.mxu0 %v1246_v60  ;;  %v1243_v23 = vperm.slane %v1241_v22, 0 }
 0x156   :  { %v1127_v41 = vpop.f32.mrf.mxu0 }
 0x159   :  { %v1140_v42 = vpop.f32.mrf.mxu1 }
 0x15a   :  { %v2032_v43 = vpop.eup %2031 }
 0x15b   :  { %v1233_v44 = vpack.c.bf16 %v2032_v43, %v2032_v43  ;;  %v1151_v46 = vpop.f32.mrf.mxu2 }
 0x15c   :  { %v1164_v47 = vpop.f32.mrf.mxu3  ;;  %v1152_v48 = vadd.f32 %v1151_v46, %v1139_v45 }
 0x15d   :  { %1274 = vmatpush.bf16.xpose.msrb.mxu1 %v1233_v44 }
 0x15e   :  { %v1165_v49 = vadd.f32 %v1164_v47, %v1152_v48 }
 0x160   :  { %v1222_v50 = vpack.c.bf16 %v1165_v49, %v1165_v49 }
 0x162   :  { %v1226_v52 = vunpack.c.l.bf16 %v1222_v50 }
 0x163   :  { %v1153_v53 = vpop.f32.mrf.mxu2 }
 0x164   :  { %v1166_v54 = vpop.f32.mrf.mxu3  ;;  %2033 = vtanh.f32 %v1226_v52  ;;  %1275 = vmatmul.bf16.vlgmr.msrb.gmra.mxu1 %v1247_v63 }
 0x16a   :  { %v2034_v55 = vpop.eup %2033 }
 0x16b   :  { %v1234_v56 = vpack.c.bf16 %v2034_v55, %v2034_v55 }
 0x16d   :  { %1287 = vmatpush.bf16.xpose.msrb.mxu2 %v1234_v56 }
 0x16e   :  { %v1177_v58 = vpop.f32.mrf.mxu0 }
 0x16f   :  { %v1190_v59 = vpop.f32.mrf.mxu1  ;;  %v1178_v3 = vadd.f32 %v1177_v58, %v367_v62 }
 0x171   :  { %v1191_v7 = vadd.f32 %v1190_v59, %v1178_v3 }
 0x174   :  { %1288 = vmatmul.bf16.vlgmr.msrb.gmra.mxu2 %v1248_v1 }
 0x176   :  { %v1179_v4 = vpop.f32.mrf.mxu0 }
 0x177   :  { %v1192_v5 = vpop.f32.mrf.mxu1 }
 0x17b   :  { %v1203_v8 = vpop.f32.mrf.mxu2 }
 0x17c   :  { %v1204_v9 = vadd.f32 %v1203_v8, %v1191_v7  ;;  %v1216_v10 = vpop.f32.mrf.mxu3 }
 0x17e   :  { %v1217_v57 = vadd.f32 %v1216_v10, %v1204_v9 }
 0x180   :  { %v1223_v11 = vpack.c.bf16 %v1217_v57, %v1217_v57 }
 0x182   :  { %v1227_v12 = vunpack.c.l.bf16 %v1223_v11 }
 0x183   :  { %v1205_v61 = vpop.f32.mrf.mxu2 }
 0x184   :  { %2035 = vtanh.f32 %v1227_v12  ;;  %v1218_v6 = vpop.f32.mrf.mxu3 }
 0x18a   :  { %v2036_v13 = vpop.eup %2035 }
 0x18b   :  { %v1235_v14 = vpack.c.bf16 %v2036_v13, %v2036_v13 }
 0x18d   :  { %1300 = vmatpush.bf16.xpose.msrb.mxu3 %v1235_v14 }
 0x194   :  { %1301 = vmatmul.bf16.vlgmr.msrb.gmra.mxu3 %v1249_v16 }
 0x1d1   :  { %v1263_v15 = vpop.f32.mrf.mxu0 }
 0x1d2   :  { %v1264_v24 = vadd.f32 %v1263_v15, %v1243_v23 }
 0x1d9   :  { %v1265_v21 = vpop.f32.mrf.mxu0 }
 0x1e1   :  { %v1276_v17 = vpop.f32.mrf.mxu1 }
 0x1e2   :  { %v1277_v25 = vadd.f32 %v1276_v17, %v1264_v24 }
 0x1e9   :  { %v1278_v18 = vpop.f32.mrf.mxu1 }
 0x1f7   :  { %v1289_v19 = vpop.f32.mrf.mxu2 }
 0x1f8   :  { %v1290_v26 = vadd.f32 %v1289_v19, %v1277_v25 }
 0x1ff   :  { %v1291_v20 = vpop.f32.mrf.mxu2 }
 0x217   :  { %v1302_v27 = vpop.f32.mrf.mxu3 }
 0x218   :  { %v1303_v28 = vadd.f32 %v1302_v27, %v1290_v26 }
 0x21a   :  { %1307 = vst.msk [vmem:[#allocation12] sm:$0x1] %vm1306_vm1, %v1303_v28 }
 0x21b   :  { %1318 = dma.vmem_to_hbm [thread:$0]  %s1314_s26, 16, %s1316_s29, [#allocation5]  }
 0x21f   :  { %v1304_v29 = vpop.f32.mrf.mxu3 }
 0x220   :  { %2187 = dma.done.wait [#allocation5], 16  }
 0x221   :  { %2188 = vsyncadd [#allocation5], 4294967280 }
 0x222   :  { %1323 = vsyncpa [#allocation4], 1 }
 0x223   :  { %1324 = vsyncpa [#allocation7], 1 }
 0x224   :  { %1325 = vsyncpa [#allocation10], 1 }
 0x225   :  { %1326 = vsyncpa [#allocation5], 1 }

</bundles_post_ra>
